<compile_context>
chip_gen: v6e
topology: v6e:2x2x1
jax: 0.10.0
libtpu: 0.0.40
codegen_flags: <defaults>
</compile_context>

<pallas_src>
import functools

import jax
import jax.numpy as jnp
from jax.experimental import pallas as pl
from jax.experimental.pallas import tpu as pltpu

Q_DEFAULT = 0.7
_VMEM_TILE_BUDGET = 12 * 1024 * 1024   # bytes earmarked for the streamed logits tiles
_MAX_TILE_N = 2048


def _gce_kernel(logits_ref, targets_ref, out_ref, row_acc_ref, *,
                n_true, tiles_per_slice, q):
    """One (tile_n, C) tile of the streaming GCE reduction."""
    ci = pl.program_id(0)          # batch slice ("parallel": both TCs on v7x)
    j = pl.program_id(1)           # tile within the slice ("arbitrary" reduction)

    @pl.when(j == 0)
    def _init():
        row_acc_ref[...] = jnp.zeros_like(row_acc_ref)

    logits = logits_ref[...].astype(jnp.float32)      # (tile_n, C); bf16 OK in HBM
    tgt = targets_ref[...]                            # (tile_n, 1) int32
    tn, c = logits.shape

    col_ids = jax.lax.broadcasted_iota(jnp.int32, (tn, c), 1)
    hit = col_ids == tgt                              # lane-iota select, no f32 one-hot

    # Target-column gather from RAW logits: independent of the row max, so the
    # two cross-lane reduces below can overlap on the XLU units.
    logit_t = jnp.sum(jnp.where(hit, logits, 0.0), axis=1, keepdims=True)   # (tn, 1)
    m = jnp.max(logits, axis=1, keepdims=True)                              # (tn, 1)
    lse = jnp.log(jnp.sum(jnp.exp(logits - m), axis=1, keepdims=True))      # (tn, 1)
    logp_t = (logit_t - m) - lse                                            # log p_target

    weight = q * jnp.exp(q * logp_t)       # == q * p_t ** q
    loss = -logp_t * weight                # CE(reduction='none') * weight

    # Mask rows past the true batch (partial last tile / clamped extra tiles).
    global_tile = ci * tiles_per_slice + j
    row_ids = global_tile * tn + jax.lax.broadcasted_iota(jnp.int32, (tn, 1), 0)
    loss = jnp.where(row_ids < n_true, loss, 0.0)

    row_acc_ref[...] += loss               # per-row accumulate; no per-step reduce

    @pl.when(j == pl.num_programs(1) - 1)
    def _finalize():
        out_ref[...] = jnp.sum(row_acc_ref[...], axis=0, keepdims=True).reshape(1, 1, 1)


def generalized_ce_loss(logits, targets, *, q=Q_DEFAULT, tile_n=None):
    """logits: [N, C] float32/bfloat16, targets: [N] int -> scalar float32 loss."""
    n, c = logits.shape
    itemsize = jnp.dtype(logits.dtype).itemsize

    # Adaptive batch tile: biggest multiple of 8 whose (double-buffered input +
    # f32 intermediates) footprint stays inside the VMEM budget, capped at 2048.
    if tile_n is None:
        c_lanes = ((c + 127) // 128) * 128
        bytes_per_row = c_lanes * (2 * itemsize + 4 * 4)
        tile_n = max(8, min(_MAX_TILE_N, (_VMEM_TILE_BUDGET // bytes_per_row) // 8 * 8))
    tile_n = max(8, (tile_n // 8) * 8)
    if n <= tile_n:
        tile_n = n                            # full-array dim: no divisibility rule

    total_tiles = pl.cdiv(n, tile_n)
    num_slices = 2 if total_tiles > 1 else 1  # megacore split on v7x; harmless on 1-TC
    tiles_per_slice = pl.cdiv(total_tiles, num_slices)
    last_tile = total_tiles - 1

    def tile_map(ci, j):
        # Clamp so extra grid steps (odd tile counts) re-read a valid tile; their
        # rows are >= n and get zeroed by the in-kernel row mask.
        return (jnp.minimum(ci * tiles_per_slice + j, last_tile), 0)

    targets2d = targets.astype(jnp.int32).reshape(n, 1)

    cost = pl.CostEstimate(
        flops=8 * n * c,
        transcendentals=n * c + 2 * n,
        bytes_accessed=n * c * itemsize + n * 4 + num_slices * 4,
    )

    kernel = functools.partial(
        _gce_kernel, n_true=n, tiles_per_slice=tiles_per_slice, q=q)

    # TODO(synk): for vocab-scale C (32k+), add a third "arbitrary" grid axis over
    # classes with an online logsumexp so the tile stays inside v7x's 64 MiB VMEM.
    partials = pl.pallas_call(
        kernel,
        out_shape=jax.ShapeDtypeStruct((num_slices, 1, 1), jnp.float32),
        grid_spec=pltpu.PrefetchScalarGridSpec(
            num_scalar_prefetch=0,
            grid=(num_slices, tiles_per_slice),
            in_specs=[
                # NOTE: on v5e with small-C configs, pipeline_mode=pl.Buffered(3)
                # here can further hide DMA issue latency; default double-buffer.
                pl.BlockSpec((tile_n, c), tile_map),
                pl.BlockSpec((tile_n, 1), tile_map),
            ],
            out_specs=pl.BlockSpec((1, 1, 1), lambda ci, j: (ci, 0, 0)),
            scratch_shapes=[pltpu.VMEM((tile_n, 1), jnp.float32)],
        ),
        compiler_params=pltpu.CompilerParams(
            dimension_semantics=("parallel", "arbitrary"),
            vmem_limit_bytes=32 * 1024 * 1024,
        ),
        cost_estimate=cost,
    )(logits, targets2d)

    # TODO(synk): the torch module's runtime NaN guards (raise NameError on NaN in
    # p / Yg) have no in-kernel equivalent; check host-side if that behavior matters.
    return jnp.sum(partials) / n


def _reference(logits, targets, q=Q_DEFAULT):
    # pure-JAX reference mirroring the PyTorch module
    logits = logits.astype(jnp.float32)
    logp = jax.nn.log_softmax(logits, axis=1)
    logp_t = jnp.take_along_axis(logp, targets[:, None].astype(jnp.int32), axis=1)[:, 0]
    p_t = jnp.exp(logp_t)
    return jnp.mean(-logp_t * (p_t ** q) * q)


if __name__ == "__main__":
    key = jax.random.PRNGKey(0)
    k1, k2, k3, k4, k5, k6 = jax.random.split(key, 6)

    # 1) CIFAR-100-style head, single-tile path (grid (1,1), full-dim blocks).
    n1, c1 = 16, 100
    logits1 = jax.random.normal(k1, (n1, c1), dtype=jnp.float32)
    targets1 = jax.random.randint(k2, (n1,), 0, c1, dtype=jnp.int32)
    out1 = jax.block_until_ready(generalized_ce_loss(logits1, targets1))
    ref1 = _reference(logits1, targets1)
    assert jnp.allclose(out1, ref1, rtol=1e-5, atol=1e-5), (out1, ref1)
    assert not jnp.isnan(out1)

    # 2) Multi-tile, 2-slice path with an ODD tile count (exercises the clamped
    #    extra grid step) and a partial last tile (row-mask path).
    n2, c2 = 600, 100
    logits2 = jax.random.normal(k3, (n2, c2), dtype=jnp.float32)
    targets2 = jax.random.randint(k4, (n2,), 0, c2, dtype=jnp.int32)
    out2 = jax.block_until_ready(generalized_ce_loss(logits2, targets2, tile_n=128))
    ref2 = _reference(logits2, targets2)
    assert jnp.allclose(out2, ref2, rtol=1e-5, atol=1e-5), (out2, ref2)
    assert not jnp.isnan(out2)

    # 3) bf16 logits caller path (halves streamed HBM bytes; upcast in-kernel).
    n3, c3 = 256, 100
    logits3 = jax.random.normal(k5, (n3, c3), dtype=jnp.bfloat16)
    targets3 = jax.random.randint(k6, (n3,), 0, c3, dtype=jnp.int32)
    out3 = jax.block_until_ready(generalized_ce_loss(logits3, targets3, tile_n=64))
    ref3 = _reference(logits3, targets3)
    assert jnp.allclose(out3, ref3, rtol=1e-4, atol=1e-4), (out3, ref3)
    assert not jnp.isnan(out3)

    print("KERNEL_OK")
</pallas_src>

<mosaic_0001>
module attributes {stable_mosaic.version = 11 : i64} {
  func.func @_gce_kernel(%arg0: i32, %arg1: i32, %arg2: memref<16x100xf32, #tpu.memory_space<vmem>>, %arg3: memref<16x1xi32, #tpu.memory_space<vmem>>, %arg4: memref<1x1x1xf32, #tpu.memory_space<vmem>>, %arg5: memref<16x1xf32, #tpu.memory_space<vmem>>) attributes {dimension_semantics = [#tpu.dimension_semantics<parallel>, #tpu.dimension_semantics<arbitrary>], iteration_bounds = array<i64: 1, 1>, scalar_prefetch = 0 : i64, scratch_operands = 1 : i64, tpu.core_type = #tpu.core_type<tc>, window_params = [{transform_indices = @transform_0, window_bounds = array<i64: 16, 100>}, {transform_indices = @transform_1, window_bounds = array<i64: 16, 1>}, {transform_indices = @transform_2, window_bounds = array<i64: 1, 1, 1>}]} {
    %c0_i32 = arith.constant 0 : i32
    %0 = arith.cmpi eq, %arg1, %c0_i32 : i32
    %1 = arith.extui %0 : i1 to i32
    %c0_i32_0 = arith.constant 0 : i32
    %2 = arith.cmpi ne, %1, %c0_i32_0 : i32
    scf.if %2 {
      %cst_18 = arith.constant 0.000000e+00 : f32
      %46 = vector.broadcast %cst_18 : f32 to vector<16x1xf32>
      %c0_19 = arith.constant 0 : index
      %c0_20 = arith.constant 0 : index
      %47 = vector.load %arg5[%c0_19, %c0_20] : memref<16x1xf32, #tpu.memory_space<vmem>>, vector<16x1xf32>
      tpu.vector_store %arg5[%c0_19, %c0_20], %46 {strides = array<i32>} : memref<16x1xf32, #tpu.memory_space<vmem>>, vector<16x1xf32>,
    } else {
    }
    %c0 = arith.constant 0 : index
    %c0_1 = arith.constant 0 : index
    %3 = vector.load %arg2[%c0, %c0_1] : memref<16x100xf32, #tpu.memory_space<vmem>>, vector<16x100xf32>
    %c0_2 = arith.constant 0 : index
    %c0_3 = arith.constant 0 : index
    %4 = vector.load %arg3[%c0_2, %c0_3] : memref<16x1xi32, #tpu.memory_space<vmem>>, vector<16x1xi32>
    %5 = tpu.iota {dimensions = array<i32: 1>} : vector<16x100xi32>
    %6 = vector.broadcast %4 : vector<16x1xi32> to vector<16x100xi32>
    %7 = arith.cmpi eq, %5, %6 : vector<16x100xi32>
    %cst = arith.constant 0.000000e+00 : f32
    %8 = vector.broadcast %cst : f32 to vector<16x100xf32>
    %9 = arith.select %7, %3, %8 : vector<16x100xi1>, vector<16x100xf32>
    %cst_4 = arith.constant dense<0.000000e+00> : vector<16xf32>
    %10 = vector.multi_reduction <add>, %9, %cst_4 [1] : vector<16x100xf32> to vector<16xf32>
    %11 = vector.shape_cast %10 : vector<16xf32> to vector<16x1xf32>
    %cst_5 = arith.constant dense<0xFF800000> : vector<16xf32>
    %12 = vector.multi_reduction <maximumf>, %3, %cst_5 [1] : vector<16x100xf32> to vector<16xf32>
    %13 = vector.shape_cast %12 : vector<16xf32> to vector<16x1xf32>
    %14 = vector.broadcast %13 : vector<16x1xf32> to vector<16x100xf32>
    %15 = arith.subf %3, %14 : vector<16x100xf32>
    %16 = math.exp %15 : vector<16x100xf32>
    %cst_6 = arith.constant dense<0.000000e+00> : vector<16xf32>
    %17 = vector.multi_reduction <add>, %16, %cst_6 [1] : vector<16x100xf32> to vector<16xf32>
    %18 = vector.shape_cast %17 : vector<16xf32> to vector<16x1xf32>
    %19 = math.log %18 : vector<16x1xf32>
    %20 = arith.subf %11, %13 : vector<16x1xf32>
    %21 = arith.subf %20, %19 : vector<16x1xf32>
    %cst_7 = arith.constant 0.699999988 : f32
    %22 = vector.broadcast %cst_7 : f32 to vector<16x1xf32>
    %23 = arith.mulf %22, %21 : vector<16x1xf32>
    %24 = math.exp %23 : vector<16x1xf32>
    %cst_8 = arith.constant 0.699999988 : f32
    %25 = vector.broadcast %cst_8 : f32 to vector<16x1xf32>
    %26 = arith.mulf %25, %24 : vector<16x1xf32>
    %cst_9 = arith.constant 0.000000e+00 : f32
    %27 = vector.broadcast %cst_9 : f32 to vector<16x1xf32>
    %28 = arith.subf %27, %21 : vector<16x1xf32>
    %29 = arith.mulf %28, %26 : vector<16x1xf32>
    %c1_i32 = arith.constant 1 : i32
    %30 = arith.muli %arg0, %c1_i32 : i32
    %31 = arith.addi %30, %arg1 : i32
    %c16_i32 = arith.constant 16 : i32
    %32 = arith.muli %31, %c16_i32 : i32
    %33 = tpu.iota {dimensions = array<i32: 0>} : vector<16x1xi32>
    %34 = vector.broadcast %32 : i32 to vector<16x1xi32>
    %35 = arith.addi %34, %33 : vector<16x1xi32>
    %c16_i32_10 = arith.constant 16 : i32
    %36 = vector.broadcast %c16_i32_10 : i32 to vector<16x1xi32>
    %37 = arith.cmpi slt, %35, %36 : vector<16x1xi32>
    %cst_11 = arith.constant 0.000000e+00 : f32
    %38 = vector.broadcast %cst_11 : f32 to vector<16x1xf32>
    %39 = arith.select %37, %29, %38 : vector<16x1xi1>, vector<16x1xf32>
    %c0_12 = arith.constant 0 : index
    %c0_13 = arith.constant 0 : index
    %40 = vector.load %arg5[%c0_12, %c0_13] : memref<16x1xf32, #tpu.memory_space<vmem>>, vector<16x1xf32>
    %41 = arith.addf %40, %39 : vector<16x1xf32>
    %c0_14 = arith.constant 0 : index
    %c0_15 = arith.constant 0 : index
    %42 = vector.load %arg5[%c0_14, %c0_15] : memref<16x1xf32, #tpu.memory_space<vmem>>, vector<16x1xf32>
    tpu.vector_store %arg5[%c0_14, %c0_15], %41 {strides = array<i32>} : memref<16x1xf32, #tpu.memory_space<vmem>>, vector<16x1xf32>,
    %c0_i32_16 = arith.constant 0 : i32
    %43 = arith.cmpi eq, %arg1, %c0_i32_16 : i32
    %44 = arith.extui %43 : i1 to i32
    %c0_i32_17 = arith.constant 0 : i32
    %45 = arith.cmpi ne, %44, %c0_i32_17 : i32
    scf.if %45 {
      %c0_18 = arith.constant 0 : index
      %c0_19 = arith.constant 0 : index
      %46 = vector.load %arg5[%c0_18, %c0_19] : memref<16x1xf32, #tpu.memory_space<vmem>>, vector<16x1xf32>
      %cst_20 = arith.constant dense<0.000000e+00> : vector<1xf32>
      %47 = vector.multi_reduction <add>, %46, %cst_20 [0] : vector<16x1xf32> to vector<1xf32>
      %48 = vector.shape_cast %47 : vector<1xf32> to vector<1x1xf32>
      %49 = vector.shape_cast %48 : vector<1x1xf32> to vector<1x1x1xf32>
      %c0_21 = arith.constant 0 : index
      %c0_22 = arith.constant 0 : index
      %c0_23 = arith.constant 0 : index
      %50 = vector.load %arg4[%c0_21, %c0_22, %c0_23] : memref<1x1x1xf32, #tpu.memory_space<vmem>>, vector<1x1x1xf32>
      tpu.vector_store %arg4[%c0_21, %c0_22, %c0_23], %49 {strides = array<i32>} : memref<1x1x1xf32, #tpu.memory_space<vmem>>, vector<1x1x1xf32>,
    } else {
    }
    return
  }
  func.func @transform_0(%arg0: i32, %arg1: i32) -> (i32, i32) {
    %c1_i32 = arith.constant 1 : i32
    %0 = arith.muli %arg0, %c1_i32 : i32
    %1 = arith.addi %0, %arg1 : i32
    %c0_i32 = arith.constant 0 : i32
    %2 = arith.minsi %1, %c0_i32 : i32
    %c0_i32_0 = arith.constant 0 : i32
    %c0_i32_1 = arith.constant 0 : i32
    return %2, %c0_i32_0 : i32, i32
  }
  func.func @transform_1(%arg0: i32, %arg1: i32) -> (i32, i32) {
    %c1_i32 = arith.constant 1 : i32
    %0 = arith.muli %arg0, %c1_i32 : i32
    %1 = arith.addi %0, %arg1 : i32
    %c0_i32 = arith.constant 0 : i32
    %2 = arith.minsi %1, %c0_i32 : i32
    %c0_i32_0 = arith.constant 0 : i32
    %c0_i32_1 = arith.constant 0 : i32
    return %2, %c0_i32_0 : i32, i32
  }
  func.func @transform_2(%arg0: i32, %arg1: i32) -> (i32, i32, i32) {
    %c0_i32 = arith.constant 0 : i32
    %c0_i32_0 = arith.constant 0 : i32
    %c0_i32_1 = arith.constant 0 : i32
    return %arg0, %c0_i32, %c0_i32_0 : i32, i32, i32
  }
}

</mosaic_0001>

<bundles_post_ra>
// kernel: tpu_custom_call.1
= control target key start
LH: loop header
LB: loop body
LE: loop exit
PB: predicated region body
PF: predicated region fallthrough
CT: control target
= control target key end

     0   :  { %vm99_vm0 = vcmask 818176   ;;  %v244_v4 = vmov 0   ;;  %s289_s0 = inlined_call_operand.vmem [shape: f32[16,100], index: 0, kind: input, shape index: {}]   ;;  %s290_s1 = inlined_call_operand.vmem [shape: s32[16,1], index: 1, kind: input, shape index: {}]   ;;  %s291_s2 = inlined_call_operand.hbm [shape: f32[1,1,1], index: 2, kind: output, shape index: {}]  }
   0x1   :  { %v83_v0 = vld [vmem:[%s289_s0] sm:$0xff]  ;;  %v84_v1 = vld [vmem:[%s289_s0 + $0x8] sm:$0xff]  ;;  %208 = vset.pattern.permute.xlu1 %v244_v4  ;;  %209 = vset.pattern.permute.xlu0 %v244_v4 }
   0x2   :  { %v85_v2 = vld [vmem:[%s290_s1] sm:$0xff]  ;;  %v106_v3 = vsel %vm99_vm0, %v83_v0, -inf }
   0x3   :  { %7 = vsyncpa [#allocation4], 0  ;;  %107 = vmax.xlane.f32.xlu0 %v106_v3  ;;  %90 = vperm.xlu1 %208, %v85_v2   ;;  %v109_v5 = vsel %vm99_vm0, %v84_v1, -inf  ;;  %v86_v6 = vld [vmem:[%s290_s1 + $0x8] sm:$0xff]  ;;  %v87_v13 = vlaneseq  ;;  %vm80_vm3 = vcmask 7168   ;;  %v245_v25 = vmov 0.0  }
   0x4   :  { %81 = vst.msk [vmem:[#allocation2] sm:$0xff] %vm80_vm3, %v245_v25  ;;  %82 = vst.msk [vmem:[#allocation2 + $0x8] sm:$0xff] %vm80_vm3, %v245_v25  ;;  %s246_s0 = smov [#allocation3]   ;;  %vm177_vm4 = vcmask 0  }
   0x5   :  { %v88_v15 = vand.u32 127, %v87_v13  ;;  %s185_s1 = sshll.u32 %s246_s0, 4  ;;  %s186_s1 = int_to_ptr.vmem [resolvable:$true] %s185_s1 }
   0x6   :  { %s222_s17 = scalar_lea.vmem %s186_s1, 16  ;;  %s226_s18 = scalar_lea.vmem %s186_s1, 32 }
   0x7   :  { %110 = vmax.xlane.f32.xlu0 %v109_v5  ;;  %93 = vperm.xlu1 %208, %v86_v6   ;;  %p223_p0 = scmp.ne.s32.totalorder %s186_s1, %s222_s17  ;;  %p227_p1 = scmp.lt.s32.totalorder %s186_s1, %s186_s1 }
   0x8   :  { %p228_p2 = scmp.lt.s32.totalorder %s226_s18, %s222_s17 }
   0xa   :  { %p229_p3 = por %p228_p2, %p227_p1 }
   0xb   :  { %v156_v45 = vld [vmem:[#allocation2] sm:$0xff]  ;;  %v157_v51 = vld [vmem:[#allocation2 + $0x8] sm:$0xff] }
   0xc   :  { %p230_p4 = pnand %p229_p3, %p223_p0 }
  0x7e   :  { %v91_v14 = vpop.permute.xlu1 %90 }
  0x7f   :  { %vm95_vm1 = vcmp.eq.s32.totalorder %v88_v15, %v91_v14 }
  0x80   :  { %v97_v18 = vsel %vm95_vm1, %v83_v0, 0.0 }
  0x81   :  { %v100_v20 = vsel %vm99_vm0, %v97_v18, 0.0 }
  0x82   :  { %v94_v16 = vpop.permute.xlu1 %93 }
  0x83   :  { %vm96_vm2 = vcmp.eq.s32.totalorder %v88_v15, %v94_v16 }
  0x84   :  { %v98_v22 = vsel %vm96_vm2, %v84_v1, 0.0 }
  0x85   :  { %v103_v24 = vsel %vm99_vm0, %v98_v22, 0.0 }
  0x8c   :  { %v108_v7 = vpop.xlane.xlu0 %107 }
  0x8d   :  { %v112_v8 = vsub.f32 %v83_v0, %v108_v7 }
  0x8f   :  { %v114_v9 = vmul.f32 1.442695, %v112_v8 }
  0x90   :  { %v111_v10 = vpop.xlane.xlu0 %110 }
  0x91   :  { %210 = vpow2.f32 %v114_v9  ;;  %v113_v11 = vsub.f32 %v84_v1, %v111_v10 }
  0x93   :  { %v116_v12 = vmul.f32 1.442695, %v113_v11 }
  0x95   :  { %212 = vpow2.f32 %v116_v12 }
  0x9e   :  { %v211_v17 = vpop.eup %210 }
  0x9f   :  { %v118_v19 = vsel %vm99_vm0, %v211_v17, 0.0 }
  0xa0   :  { %119 = vadd.xlane.f32.xlu0 %v118_v19 }
  0xa2   :  { %v213_v21 = vpop.eup %212 }
  0xa3   :  { %v121_v23 = vsel %vm99_vm0, %v213_v21, 0.0 }
  0xa4   :  { %122 = vadd.xlane.f32.xlu1 %v121_v23  ;;  %101 = vadd.xlane.f32.xlu0 %v100_v20 }
  0xa8   :  { %104 = vadd.xlane.f32.xlu0 %v103_v24 }
 0x129   :  { %v120_v26 = vpop.xlane.xlu0 %119 }
 0x12a   :  { %214 = vlog2.f32 %v120_v26 }
 0x12d   :  { %v123_v27 = vpop.xlane.xlu1 %122  ;;  %v102_v28 = vpop.xlane.xlu0 %101 }
 0x12e   :  { %216 = vlog2.f32 %v123_v27  ;;  %v128_v31 = vsub.f32 %v102_v28, %v108_v7 }
 0x131   :  { %v105_v32 = vpop.xlane.xlu0 %104 }
 0x132   :  { %v129_v37 = vsub.f32 %v105_v32, %v111_v10 }
 0x137   :  { %v215_v29 = vpop.eup %214 }
 0x138   :  { %v125_v30 = vmul.f32 0.6931472, %v215_v29 }
 0x13a   :  { %v130_v33 = vsub.f32 %v128_v31, %v125_v30 }
 0x13b   :  { %v217_v34 = vpop.eup %216 }
 0x13c   :  { %v127_v35 = vmul.f32 0.6931472, %v217_v34  ;;  %v132_v36 = vmul.f32 0.7, %v130_v33  ;;  %v140_v44 = vsub.f32 0.0, %v130_v33 }
 0x13e   :  { %v134_v38 = vmul.f32 1.442695, %v132_v36  ;;  %v131_v39 = vsub.f32 %v129_v37, %v127_v35 }
 0x140   :  { %218 = vpow2.f32 %v134_v38  ;;  %v133_v40 = vmul.f32 0.7, %v131_v39  ;;  %v141_v50 = vsub.f32 0.0, %v131_v39 }
 0x142   :  { %v136_v41 = vmul.f32 1.442695, %v133_v40 }
 0x144   :  { %220 = vpow2.f32 %v136_v41 }
 0x14d   :  { %v219_v42 = vpop.eup %218 }
 0x14e   :  { %v138_v43 = vmul.f32 0.7, %v219_v42 }
 0x150   :  { %v142_v46 = vmul.f32 %v140_v44, %v138_v43 }
 0x151   :  { %v221_v47 = vpop.eup %220 }
 0x152   :  { %v158_v48 = vadd.f32 %v156_v45, %v142_v46  ;;  %v139_v49 = vmul.f32 0.7, %v221_v47 }
 0x154   :  { %161 = vst.msk [vmem:[#allocation2] sm:$0xff] %vm80_vm3, %v158_v48  ;;  %v143_v52 = vmul.f32 %v141_v50, %v139_v49 }
 0x156   :  { %v159_v53 = vadd.f32 %v157_v51, %v143_v52 }
 0x158   :  { %162 = vst.msk [vmem:[#allocation2 + $0x8] sm:$0xff] %vm80_vm3, %v159_v53 }
 0x15b   :  { %v166_v54 = vld [vmem:[#allocation2] sm:$0xff] }
 0x15c   :  { %v168_v56 = vsel %vm80_vm3, %v166_v54, 0.0 }
 0x15f   :  { %v167_v55 = vld [vmem:[#allocation2 + $0x8] sm:$0xff] }
 0x160   :  { %v169_v57 = vsel %vm80_vm3, %v167_v55, 0.0 }
 0x161   :  { %v170_v58 = vadd.f32 %v169_v57, %v168_v56 }
 0x163   :  { %v171_v59 = vrot.slane %v170_v58, 4 }
 0x165   :  { %v172_v60 = vadd.f32 %v171_v59, %v170_v58 }
 0x167   :  { %v173_v61 = vrot.slane %v172_v60, 2 }
 0x169   :  { %v174_v62 = vadd.f32 %v173_v61, %v172_v60 }
 0x16b   :  { %v175_v63 = vrot.slane %v174_v62, 1 }
 0x16d   :  { %v176_v0 = vadd.f32 %v175_v63, %v174_v62 }
 0x16f   :  { %178 = vst.msk [vmem:[#allocation3] sm:$0x1] %vm177_vm4, %v176_v0 }
 0x170   :  { %233 = shalt.err (!%p230_p4)
}
 0x171   :  { %188 = dma.vmem_to_hbm [thread:$0]  %s186_s1, 16, %s291_s2, [#allocation4]  }
 0x172   :  { %242 = dma.done.wait [#allocation4], 16  }
 0x173   :  { %243 = vsyncadd [#allocation4], 4294967280 }
 0x174   :  { %192 = vsyncpa [#allocation4], 1 }

</bundles_post_ra>
